<compile_context>
chip_gen: v6e
topology: v6e:2x2x1
jax: 0.10.0
libtpu: 0.0.40
codegen_flags: <defaults>
</compile_context>

<pallas_src>
import jax
import jax.numpy as jnp
from jax.experimental import pallas as pl
from jax.experimental.pallas import tpu as pltpu

HID_PAD = 128   # lane-dense padded hidden width
OUT_DIM = 128


# --------------------------------------------------------------------------
# Pallas kernel: full GCNEncoder forward for ONE graph-batch (grid axis = batch)
# --------------------------------------------------------------------------
def gcn_encoder_kernel(x_ref, adj_ref, mask_ref, mask_t_ref,
                       w_emb_ref, w1_ref, w2_ref, w_out_ref, vec_ref,
                       out_ref):
    x = x_ref[0]            # [N, D_in]
    adj = adj_ref[0]        # [N, N]   normalized dense adjacency
    mask = mask_ref[0]      # [G, N]   one-hot graph assignment
    mask_t = mask_t_ref[0]  # [N, G]   transposed assignment (sublane-aligned)

    # packed per-channel parameters: one (8,128) tile
    vec = vec_ref[...]
    b_emb = vec[0:1, :]
    g1, bt1 = vec[1:2, :], vec[2:3, :]
    g2, bt2 = vec[3:4, :], vec[4:5, :]
    b_out = vec[5:6, :]

    n_nodes = x.shape[0]
    inv_n = jnp.float32(1.0 / n_nodes)
    ones_row = jnp.ones((1, n_nodes), jnp.float32)

    # node_embedding + ReLU (padded channels stay exactly zero)
    h = jnp.dot(x, w_emb_ref[...], preferred_element_type=jnp.float32) + b_emb
    h = jnp.maximum(h, 0.0)

    def gcn_bn_relu(h, w_ref, gamma, beta):
        # GCNConv: A_norm @ (X @ W); bias omitted (cancelled by BN mean-sub)
        hw = jnp.dot(h, w_ref[...], preferred_element_type=jnp.float32)
        h = jnp.dot(adj, hw, preferred_element_type=jnp.float32)
        # BatchNorm1d (training-mode batch stats) via MXU ones-matmul reductions
        mean = jnp.dot(ones_row, h, preferred_element_type=jnp.float32) * inv_n
        hc = h - mean
        var = jnp.dot(ones_row, hc * hc, preferred_element_type=jnp.float32) * inv_n
        h = hc * jax.lax.rsqrt(var + 1e-5) * gamma + beta
        return jnp.maximum(h, 0.0)

    h = gcn_bn_relu(h, w1_ref, g1, bt1)
    h = gcn_bn_relu(h, w2_ref, g2, bt2)

    # global mean pool: segment-sum matmul, EUP reciprocal for the divide
    counts = jnp.sum(mask, axis=1, keepdims=True)                    # [G, 1]
    inv_counts = pl.reciprocal(jnp.maximum(counts, 1.0), approx=True)
    x_mean = jnp.dot(mask, h, preferred_element_type=jnp.float32) * inv_counts

    # global max pool: G small 2-D masked maxes (no [G,N,H] broadcast)
    maxes = []
    for g in range(mask.shape[0]):        # G is a small compile-time constant
        sel = mask_t[:, g:g + 1] > 0.5                               # [N, 1]
        hg = jnp.where(sel, h, jnp.float32(-1e30))                   # [N, HP]
        maxes.append(jnp.max(hg, axis=0, keepdims=True))             # [1, HP]
    x_max = jnp.concatenate(maxes, axis=0)                           # [G, HP]
    x_max = jnp.where(counts > 0.0, x_max, 0.0)                      # empty-graph guard

    # output_projection on concat([x_max, x_mean]): one K=2*HP MXU issue
    x_cat = jnp.concatenate([x_max, x_mean], axis=-1)                # [G, 2*HP]
    out = jnp.dot(x_cat, w_out_ref[...], preferred_element_type=jnp.float32) + b_out
    out_ref[0, :, :] = out


def gcn_encoder_forward(x, adj, mask, kp):
    """x: [B,N,D_in], adj: [B,N,N], mask: [B,G,N]; kp: padded/packed params."""
    B, N, D_in = x.shape
    G = mask.shape[1]
    mask_t = jnp.swapaxes(mask, 1, 2)                                # [B, N, G]

    batched = lambda shape: pl.BlockSpec((1,) + shape, lambda b: (b, 0, 0))
    shared = lambda shape: pl.BlockSpec(shape, lambda b: (0, 0))

    grid_spec = pltpu.PrefetchScalarGridSpec(
        num_scalar_prefetch=0,
        grid=(B,),
        in_specs=[
            batched((N, D_in)),            # x
            batched((N, N)),               # adj
            batched((G, N)),               # mask
            batched((N, G)),               # mask_t
            shared((D_in, HID_PAD)),       # w_emb
            shared((HID_PAD, HID_PAD)),    # w1
            shared((HID_PAD, HID_PAD)),    # w2
            shared((2 * HID_PAD, OUT_DIM)),  # w_out (concat layout)
            shared((8, 128)),              # packed per-channel vectors
        ],
        out_specs=pl.BlockSpec((1, G, OUT_DIM), lambda b: (b, 0, 0)),
    )
    return pl.pallas_call(
        gcn_encoder_kernel,
        out_shape=jax.ShapeDtypeStruct((B, G, OUT_DIM), jnp.float32),
        grid_spec=grid_spec,
        compiler_params=pltpu.CompilerParams(
            dimension_semantics=("parallel",)),
    )(x, adj, mask, mask_t,
      kp["w_emb"], kp["w1"], kp["w2"], kp["w_out"], kp["vec"])


# --------------------------------------------------------------------------
# Glue: dense normalized adjacency + pooling mask (plain JAX)
# --------------------------------------------------------------------------
def build_norm_adj(edge_index, num_nodes):
    """PyG GCNConv default: add self-loops, symmetric D^-1/2 (A+I) D^-1/2."""
    src, dst = edge_index[0], edge_index[1]
    loop = jnp.arange(num_nodes, dtype=edge_index.dtype)
    src = jnp.concatenate([src, loop])
    dst = jnp.concatenate([dst, loop])
    deg = jnp.zeros((num_nodes,), jnp.float32).at[dst].add(1.0)
    dinv = jax.lax.rsqrt(jnp.maximum(deg, 1e-12))
    dinv = jnp.where(deg > 0, dinv, 0.0)
    w = dinv[src] * dinv[dst]
    adj = jnp.zeros((num_nodes, num_nodes), jnp.float32).at[dst, src].add(w)
    return adj


def build_pool_mask(batch, num_graphs):
    return (batch[None, :] == jnp.arange(num_graphs)[:, None]).astype(jnp.float32)


# --------------------------------------------------------------------------
# Parameter init (logical, PyTorch-shaped) and kernel-side padding / packing
# --------------------------------------------------------------------------
def init_params(key, input_dim=4, hidden_dim=64, out_dim=128):
    ks = jax.random.split(key, 8)
    s = 0.1
    return {
        "w_emb": s * jax.random.normal(ks[0], (input_dim, hidden_dim), jnp.float32),
        "b_emb": s * jax.random.normal(ks[1], (hidden_dim,), jnp.float32),
        "w1": s * jax.random.normal(ks[2], (hidden_dim, hidden_dim), jnp.float32),
        "b1": s * jax.random.normal(ks[3], (hidden_dim,), jnp.float32),
        "g1": jnp.ones((hidden_dim,), jnp.float32),
        "bt1": jnp.zeros((hidden_dim,), jnp.float32),
        "w2": s * jax.random.normal(ks[4], (hidden_dim, hidden_dim), jnp.float32),
        "b2": s * jax.random.normal(ks[5], (hidden_dim,), jnp.float32),
        "g2": jnp.ones((hidden_dim,), jnp.float32),
        "bt2": jnp.zeros((hidden_dim,), jnp.float32),
        "w_out": s * jax.random.normal(ks[6], (2 * hidden_dim, out_dim), jnp.float32),
        "b_out": s * jax.random.normal(ks[7], (out_dim,), jnp.float32),
    }


def pack_params(p, hid_pad=HID_PAD, out_dim=OUT_DIM):
    """Zero-pad hidden to 128 lanes and pack tiny per-channel vectors into one tile."""
    d_in, hid = p["w_emb"].shape

    def pad_mat(w, rows, cols):
        return jnp.zeros((rows, cols), jnp.float32).at[:w.shape[0], :w.shape[1]].set(w)

    def pad_vec(v, width=128):
        return jnp.zeros((width,), jnp.float32).at[:v.shape[0]].set(v)

    # concat layout: lanes [0:hid_pad) = x_max block, [hid_pad:2*hid_pad) = x_mean block
    w_out_p = jnp.zeros((2 * hid_pad, out_dim), jnp.float32)
    w_out_p = w_out_p.at[:hid, :].set(p["w_out"][:hid])
    w_out_p = w_out_p.at[hid_pad:hid_pad + hid, :].set(p["w_out"][hid:])

    vec = jnp.stack([
        pad_vec(p["b_emb"]),
        pad_vec(p["g1"]), pad_vec(p["bt1"]),
        pad_vec(p["g2"]), pad_vec(p["bt2"]),
        pad_vec(p["b_out"]),
        jnp.zeros((128,), jnp.float32), jnp.zeros((128,), jnp.float32),
    ], axis=0)                                                      # [8, 128]

    return {
        "w_emb": pad_mat(p["w_emb"], d_in, hid_pad),
        "w1": pad_mat(p["w1"], hid_pad, hid_pad),
        "w2": pad_mat(p["w2"], hid_pad, hid_pad),
        "w_out": w_out_p,
        "vec": vec,
    }


# --------------------------------------------------------------------------
# Pure-JAX reference (faithful to the PyTorch module, unpadded H=64)
# --------------------------------------------------------------------------
def reference_forward(x, adj, mask, p):
    h = jnp.maximum(x @ p["w_emb"] + p["b_emb"], 0.0)

    def layer(h, w, b, g, bt):
        h = adj @ (h @ w) + b
        mean = jnp.mean(h, axis=0, keepdims=True)
        var = jnp.mean((h - mean) ** 2, axis=0, keepdims=True)
        h = (h - mean) / jnp.sqrt(var + 1e-5) * g + bt
        return jnp.maximum(h, 0.0)

    h = layer(h, p["w1"], p["b1"], p["g1"], p["bt1"])
    h = layer(h, p["w2"], p["b2"], p["g2"], p["bt2"])
    counts = jnp.maximum(jnp.sum(mask, axis=1, keepdims=True), 1.0)
    x_mean = (mask @ h) / counts
    x_max = jnp.max(jnp.where(mask[:, :, None] > 0.5, h[None], -1e30), axis=1)
    x_cat = jnp.concatenate([x_max, x_mean], axis=-1)
    return x_cat @ p["w_out"] + p["b_out"]


if __name__ == "__main__":
    B, N, D_IN, HID, G = 2, 16, 4, 64, 2   # B independent graph-batches (grid axis)

    key = jax.random.PRNGKey(0)
    k_x, k_p = jax.random.split(key)

    # node features [B, N, D_in]
    x = jax.random.normal(k_x, (B, N, D_IN), jnp.float32)

    # two graphs of 8 nodes each, bidirectional ring edges within each graph
    src, dst = [], []
    for g in range(G):
        base = g * 8
        for i in range(8):
            a, b = base + i, base + (i + 1) % 8
            src += [a, b]
            dst += [b, a]
    edge_index = jnp.array([src, dst], dtype=jnp.int32)      # [2, 32]
    batch = jnp.array([0] * 8 + [1] * 8, dtype=jnp.int32)    # [N]

    adj1 = build_norm_adj(edge_index, N)       # [N, N]
    mask1 = build_pool_mask(batch, G)          # [G, N]
    adj = jnp.stack([adj1] * B)                # [B, N, N]
    mask = jnp.stack([mask1] * B)              # [B, G, N]

    params = init_params(k_p, D_IN, HID, OUT_DIM)
    kparams = pack_params(params)

    out = gcn_encoder_forward(x, adj, mask, kparams)
    out = jax.block_until_ready(out)

    ref = jnp.stack([reference_forward(x[b], adj1, mask1, params) for b in range(B)])
    assert out.shape == (B, G, OUT_DIM)
    assert jnp.allclose(out, ref, atol=2e-3, rtol=2e-3), "mismatch vs JAX reference"

    print("KERNEL_OK")
</pallas_src>

<mosaic_0001>
module attributes {stable_mosaic.version = 11 : i64} {
  func.func @gcn_encoder_kernel(%arg0: i32, %arg1: memref<1x16x4xf32, #tpu.memory_space<vmem>>, %arg2: memref<1x16x16xf32, #tpu.memory_space<vmem>>, %arg3: memref<1x2x16xf32, #tpu.memory_space<vmem>>, %arg4: memref<1x16x2xf32, #tpu.memory_space<vmem>>, %arg5: memref<4x128xf32, #tpu.memory_space<vmem>>, %arg6: memref<128x128xf32, #tpu.memory_space<vmem>>, %arg7: memref<128x128xf32, #tpu.memory_space<vmem>>, %arg8: memref<256x128xf32, #tpu.memory_space<vmem>>, %arg9: memref<8x128xf32, #tpu.memory_space<vmem>>, %arg10: memref<1x2x128xf32, #tpu.memory_space<vmem>>) attributes {dimension_semantics = [#tpu.dimension_semantics<parallel>], iteration_bounds = array<i64: 2>, scalar_prefetch = 0 : i64, scratch_operands = 0 : i64, tpu.core_type = #tpu.core_type<tc>, window_params = [{transform_indices = @transform_0, window_bounds = array<i64: 1, 16, 4>}, {transform_indices = @transform_1, window_bounds = array<i64: 1, 16, 16>}, {transform_indices = @transform_2, window_bounds = array<i64: 1, 2, 16>}, {transform_indices = @transform_3, window_bounds = array<i64: 1, 16, 2>}, {pipeline_mode = #tpu.pipeline_mode<synchronous>, transform_indices = @transform_4, window_bounds = array<i64: 4, 128>}, {pipeline_mode = #tpu.pipeline_mode<synchronous>, transform_indices = @transform_5, window_bounds = array<i64: 128, 128>}, {pipeline_mode = #tpu.pipeline_mode<synchronous>, transform_indices = @transform_6, window_bounds = array<i64: 128, 128>}, {pipeline_mode = #tpu.pipeline_mode<synchronous>, transform_indices = @transform_7, window_bounds = array<i64: 256, 128>}, {pipeline_mode = #tpu.pipeline_mode<synchronous>, transform_indices = @transform_8, window_bounds = array<i64: 8, 128>}, {transform_indices = @transform_9, window_bounds = array<i64: 1, 2, 128>}]} {
    %c0 = arith.constant 0 : index
    %c0_0 = arith.constant 0 : index
    %c0_1 = arith.constant 0 : index
    %0 = vector.load %arg1[%c0, %c0_0, %c0_1] : memref<1x16x4xf32, #tpu.memory_space<vmem>>, vector<1x16x4xf32>
    %1 = vector.shape_cast %0 : vector<1x16x4xf32> to vector<16x4xf32>
    %c0_2 = arith.constant 0 : index
    %c0_3 = arith.constant 0 : index
    %c0_4 = arith.constant 0 : index
    %2 = vector.load %arg2[%c0_2, %c0_3, %c0_4] : memref<1x16x16xf32, #tpu.memory_space<vmem>>, vector<1x16x16xf32>
    %3 = vector.shape_cast %2 : vector<1x16x16xf32> to vector<16x16xf32>
    %c0_5 = arith.constant 0 : index
    %c0_6 = arith.constant 0 : index
    %c0_7 = arith.constant 0 : index
    %4 = vector.load %arg3[%c0_5, %c0_6, %c0_7] : memref<1x2x16xf32, #tpu.memory_space<vmem>>, vector<1x2x16xf32>
    %5 = vector.shape_cast %4 : vector<1x2x16xf32> to vector<2x16xf32>
    %c0_8 = arith.constant 0 : index
    %c0_9 = arith.constant 0 : index
    %c0_10 = arith.constant 0 : index
    %6 = vector.load %arg4[%c0_8, %c0_9, %c0_10] : memref<1x16x2xf32, #tpu.memory_space<vmem>>, vector<1x16x2xf32>
    %7 = vector.shape_cast %6 : vector<1x16x2xf32> to vector<16x2xf32>
    %c0_11 = arith.constant 0 : index
    %c0_12 = arith.constant 0 : index
    %8 = vector.load %arg9[%c0_11, %c0_12] : memref<8x128xf32, #tpu.memory_space<vmem>>, vector<8x128xf32>
    %9 = vector.extract_strided_slice %8 {offsets = [0, 0], sizes = [1, 128], strides = [1, 1]} : vector<8x128xf32> to vector<1x128xf32>
    %10 = vector.extract_strided_slice %8 {offsets = [1, 0], sizes = [1, 128], strides = [1, 1]} : vector<8x128xf32> to vector<1x128xf32>
    %11 = vector.extract_strided_slice %8 {offsets = [2, 0], sizes = [1, 128], strides = [1, 1]} : vector<8x128xf32> to vector<1x128xf32>
    %12 = vector.extract_strided_slice %8 {offsets = [3, 0], sizes = [1, 128], strides = [1, 1]} : vector<8x128xf32> to vector<1x128xf32>
    %13 = vector.extract_strided_slice %8 {offsets = [4, 0], sizes = [1, 128], strides = [1, 1]} : vector<8x128xf32> to vector<1x128xf32>
    %14 = vector.extract_strided_slice %8 {offsets = [5, 0], sizes = [1, 128], strides = [1, 1]} : vector<8x128xf32> to vector<1x128xf32>
    %cst = arith.constant 1.000000e+00 : f32
    %15 = vector.broadcast %cst : f32 to vector<1x16xf32>
    %c0_13 = arith.constant 0 : index
    %c0_14 = arith.constant 0 : index
    %16 = vector.load %arg5[%c0_13, %c0_14] : memref<4x128xf32, #tpu.memory_space<vmem>>, vector<4x128xf32>
    %cst_15 = arith.constant dense<0.000000e+00> : vector<16x128xf32>
    %17 = tpu.matmul %1, %16, %cst_15 {dimension_numbers = #tpu.dot_dimension_numbers<[1], [0], [0], [1], [0, 0, 1, 1], [], []>} : vector<16x4xf32>, vector<4x128xf32>, vector<16x128xf32> -> vector<16x128xf32>
    %18 = vector.broadcast %9 : vector<1x128xf32> to vector<16x128xf32>
    %19 = arith.addf %17, %18 : vector<16x128xf32>
    %cst_16 = arith.constant 0.000000e+00 : f32
    %20 = vector.broadcast %cst_16 : f32 to vector<16x128xf32>
    %21 = arith.maximumf %19, %20 : vector<16x128xf32>
    %c0_17 = arith.constant 0 : index
    %c0_18 = arith.constant 0 : index
    %22 = vector.load %arg6[%c0_17, %c0_18] : memref<128x128xf32, #tpu.memory_space<vmem>>, vector<128x128xf32>
    %cst_19 = arith.constant dense<0.000000e+00> : vector<16x128xf32>
    %23 = tpu.matmul %21, %22, %cst_19 {dimension_numbers = #tpu.dot_dimension_numbers<[1], [0], [0], [1], [0, 0, 1, 1], [], []>} : vector<16x128xf32>, vector<128x128xf32>, vector<16x128xf32> -> vector<16x128xf32>
    %cst_20 = arith.constant dense<0.000000e+00> : vector<16x128xf32>
    %24 = tpu.matmul %3, %23, %cst_20 {dimension_numbers = #tpu.dot_dimension_numbers<[1], [0], [0], [1], [0, 0, 1, 1], [], []>} : vector<16x16xf32>, vector<16x128xf32>, vector<16x128xf32> -> vector<16x128xf32>
    %cst_21 = arith.constant dense<0.000000e+00> : vector<1x128xf32>
    %25 = tpu.matmul %15, %24, %cst_21 {dimension_numbers = #tpu.dot_dimension_numbers<[1], [0], [0], [1], [0, 0, 1, 1], [], []>} : vector<1x16xf32>, vector<16x128xf32>, vector<1x128xf32> -> vector<1x128xf32>
    %cst_22 = arith.constant 6.250000e-02 : f32
    %26 = vector.broadcast %cst_22 : f32 to vector<1x128xf32>
    %27 = arith.mulf %25, %26 : vector<1x128xf32>
    %28 = vector.broadcast %27 : vector<1x128xf32> to vector<16x128xf32>
    %29 = arith.subf %24, %28 : vector<16x128xf32>
    %30 = arith.mulf %29, %29 : vector<16x128xf32>
    %cst_23 = arith.constant dense<0.000000e+00> : vector<1x128xf32>
    %31 = tpu.matmul %15, %30, %cst_23 {dimension_numbers = #tpu.dot_dimension_numbers<[1], [0], [0], [1], [0, 0, 1, 1], [], []>} : vector<1x16xf32>, vector<16x128xf32>, vector<1x128xf32> -> vector<1x128xf32>
    %cst_24 = arith.constant 6.250000e-02 : f32
    %32 = vector.broadcast %cst_24 : f32 to vector<1x128xf32>
    %33 = arith.mulf %31, %32 : vector<1x128xf32>
    %cst_25 = arith.constant 9.99999974E-6 : f32
    %34 = vector.broadcast %cst_25 : f32 to vector<1x128xf32>
    %35 = arith.addf %33, %34 : vector<1x128xf32>
    %36 = math.rsqrt %35 : vector<1x128xf32>
    %37 = vector.broadcast %36 : vector<1x128xf32> to vector<16x128xf32>
    %38 = arith.mulf %29, %37 : vector<16x128xf32>
    %39 = vector.broadcast %10 : vector<1x128xf32> to vector<16x128xf32>
    %40 = arith.mulf %38, %39 : vector<16x128xf32>
    %41 = vector.broadcast %11 : vector<1x128xf32> to vector<16x128xf32>
    %42 = arith.addf %40, %41 : vector<16x128xf32>
    %cst_26 = arith.constant 0.000000e+00 : f32
    %43 = vector.broadcast %cst_26 : f32 to vector<16x128xf32>
    %44 = arith.maximumf %42, %43 : vector<16x128xf32>
    %c0_27 = arith.constant 0 : index
    %c0_28 = arith.constant 0 : index
    %45 = vector.load %arg7[%c0_27, %c0_28] : memref<128x128xf32, #tpu.memory_space<vmem>>, vector<128x128xf32>
    %cst_29 = arith.constant dense<0.000000e+00> : vector<16x128xf32>
    %46 = tpu.matmul %44, %45, %cst_29 {dimension_numbers = #tpu.dot_dimension_numbers<[1], [0], [0], [1], [0, 0, 1, 1], [], []>} : vector<16x128xf32>, vector<128x128xf32>, vector<16x128xf32> -> vector<16x128xf32>
    %cst_30 = arith.constant dense<0.000000e+00> : vector<16x128xf32>
    %47 = tpu.matmul %3, %46, %cst_30 {dimension_numbers = #tpu.dot_dimension_numbers<[1], [0], [0], [1], [0, 0, 1, 1], [], []>} : vector<16x16xf32>, vector<16x128xf32>, vector<16x128xf32> -> vector<16x128xf32>
    %cst_31 = arith.constant dense<0.000000e+00> : vector<1x128xf32>
    %48 = tpu.matmul %15, %47, %cst_31 {dimension_numbers = #tpu.dot_dimension_numbers<[1], [0], [0], [1], [0, 0, 1, 1], [], []>} : vector<1x16xf32>, vector<16x128xf32>, vector<1x128xf32> -> vector<1x128xf32>
    %cst_32 = arith.constant 6.250000e-02 : f32
    %49 = vector.broadcast %cst_32 : f32 to vector<1x128xf32>
    %50 = arith.mulf %48, %49 : vector<1x128xf32>
    %51 = vector.broadcast %50 : vector<1x128xf32> to vector<16x128xf32>
    %52 = arith.subf %47, %51 : vector<16x128xf32>
    %53 = arith.mulf %52, %52 : vector<16x128xf32>
    %cst_33 = arith.constant dense<0.000000e+00> : vector<1x128xf32>
    %54 = tpu.matmul %15, %53, %cst_33 {dimension_numbers = #tpu.dot_dimension_numbers<[1], [0], [0], [1], [0, 0, 1, 1], [], []>} : vector<1x16xf32>, vector<16x128xf32>, vector<1x128xf32> -> vector<1x128xf32>
    %cst_34 = arith.constant 6.250000e-02 : f32
    %55 = vector.broadcast %cst_34 : f32 to vector<1x128xf32>
    %56 = arith.mulf %54, %55 : vector<1x128xf32>
    %cst_35 = arith.constant 9.99999974E-6 : f32
    %57 = vector.broadcast %cst_35 : f32 to vector<1x128xf32>
    %58 = arith.addf %56, %57 : vector<1x128xf32>
    %59 = math.rsqrt %58 : vector<1x128xf32>
    %60 = vector.broadcast %59 : vector<1x128xf32> to vector<16x128xf32>
    %61 = arith.mulf %52, %60 : vector<16x128xf32>
    %62 = vector.broadcast %12 : vector<1x128xf32> to vector<16x128xf32>
    %63 = arith.mulf %61, %62 : vector<16x128xf32>
    %64 = vector.broadcast %13 : vector<1x128xf32> to vector<16x128xf32>
    %65 = arith.addf %63, %64 : vector<16x128xf32>
    %cst_36 = arith.constant 0.000000e+00 : f32
    %66 = vector.broadcast %cst_36 : f32 to vector<16x128xf32>
    %67 = arith.maximumf %65, %66 : vector<16x128xf32>
    %cst_37 = arith.constant dense<0.000000e+00> : vector<2xf32>
    %68 = vector.multi_reduction <add>, %5, %cst_37 [1] : vector<2x16xf32> to vector<2xf32>
    %69 = vector.shape_cast %68 : vector<2xf32> to vector<2x1xf32>
    %cst_38 = arith.constant 1.000000e+00 : f32
    %70 = vector.broadcast %cst_38 : f32 to vector<2x1xf32>
    %71 = arith.maximumf %69, %70 : vector<2x1xf32>
    %72 = tpu.reciprocal %71 {approx = true} : vector<2x1xf32> -> vector<2x1xf32>
    %cst_39 = arith.constant dense<0.000000e+00> : vector<2x128xf32>
    %73 = tpu.matmul %5, %67, %cst_39 {dimension_numbers = #tpu.dot_dimension_numbers<[1], [0], [0], [1], [0, 0, 1, 1], [], []>} : vector<2x16xf32>, vector<16x128xf32>, vector<2x128xf32> -> vector<2x128xf32>
    %74 = vector.broadcast %72 : vector<2x1xf32> to vector<2x128xf32>
    %75 = arith.mulf %73, %74 : vector<2x128xf32>
    %76 = vector.extract_strided_slice %7 {offsets = [0, 0], sizes = [16, 1], strides = [1, 1]} : vector<16x2xf32> to vector<16x1xf32>
    %cst_40 = arith.constant 5.000000e-01 : f32
    %77 = vector.broadcast %cst_40 : f32 to vector<16x1xf32>
    %78 = arith.cmpf ogt, %76, %77 : vector<16x1xf32>
    %cst_41 = arith.constant -1.000000e+30 : f32
    %79 = vector.shape_cast %78 : vector<16x1xi1> to vector<16x1xi1>
    %80 = vector.broadcast %79 : vector<16x1xi1> to vector<16x128xi1>
    %81 = vector.broadcast %cst_41 : f32 to vector<16x128xf32>
    %82 = arith.select %80, %67, %81 : vector<16x128xi1>, vector<16x128xf32>
    %cst_42 = arith.constant dense<0xFF800000> : vector<128xf32>
    %83 = vector.multi_reduction <maximumf>, %82, %cst_42 [0] : vector<16x128xf32> to vector<128xf32>
    %84 = vector.shape_cast %83 : vector<128xf32> to vector<1x128xf32>
    %85 = vector.extract_strided_slice %7 {offsets = [0, 1], sizes = [16, 1], strides = [1, 1]} : vector<16x2xf32> to vector<16x1xf32>
    %cst_43 = arith.constant 5.000000e-01 : f32
    %86 = vector.broadcast %cst_43 : f32 to vector<16x1xf32>
    %87 = arith.cmpf ogt, %85, %86 : vector<16x1xf32>
    %cst_44 = arith.constant -1.000000e+30 : f32
    %88 = vector.shape_cast %87 : vector<16x1xi1> to vector<16x1xi1>
    %89 = vector.broadcast %88 : vector<16x1xi1> to vector<16x128xi1>
    %90 = vector.broadcast %cst_44 : f32 to vector<16x128xf32>
    %91 = arith.select %89, %67, %90 : vector<16x128xi1>, vector<16x128xf32>
    %cst_45 = arith.constant dense<0xFF800000> : vector<128xf32>
    %92 = vector.multi_reduction <maximumf>, %91, %cst_45 [0] : vector<16x128xf32> to vector<128xf32>
    %93 = vector.shape_cast %92 : vector<128xf32> to vector<1x128xf32>
    %94 = tpu.concatenate %84, %93 in 0 : vector<1x128xf32>, vector<1x128xf32> -> vector<2x128xf32>
    %cst_46 = arith.constant 0.000000e+00 : f32
    %95 = vector.broadcast %cst_46 : f32 to vector<2x1xf32>
    %96 = arith.cmpf ogt, %69, %95 : vector<2x1xf32>
    %cst_47 = arith.constant 0.000000e+00 : f32
    %97 = vector.shape_cast %96 : vector<2x1xi1> to vector<2x1xi1>
    %98 = vector.broadcast %97 : vector<2x1xi1> to vector<2x128xi1>
    %99 = vector.broadcast %cst_47 : f32 to vector<2x128xf32>
    %100 = arith.select %98, %94, %99 : vector<2x128xi1>, vector<2x128xf32>
    %101 = tpu.concatenate %100, %75 in 1 : vector<2x128xf32>, vector<2x128xf32> -> vector<2x256xf32>
    %c0_48 = arith.constant 0 : index
    %c0_49 = arith.constant 0 : index
    %102 = vector.load %arg8[%c0_48, %c0_49] : memref<256x128xf32, #tpu.memory_space<vmem>>, vector<256x128xf32>
    %cst_50 = arith.constant dense<0.000000e+00> : vector<2x128xf32>
    %103 = tpu.matmul %101, %102, %cst_50 {dimension_numbers = #tpu.dot_dimension_numbers<[1], [0], [0], [1], [0, 0, 1, 1], [], []>} : vector<2x256xf32>, vector<256x128xf32>, vector<2x128xf32> -> vector<2x128xf32>
    %104 = vector.broadcast %14 : vector<1x128xf32> to vector<2x128xf32>
    %105 = arith.addf %103, %104 : vector<2x128xf32>
    %c0_51 = arith.constant 0 : index
    %c0_52 = arith.constant 0 : index
    %c0_53 = arith.constant 0 : index
    %106 = vector.load %arg10[%c0_51, %c0_52, %c0_53] : memref<1x2x128xf32, #tpu.memory_space<vmem>>, vector<1x2x128xf32>
    %107 = vector.shape_cast %106 : vector<1x2x128xf32> to vector<2x128xf32>
    %108 = vector.shape_cast %105 : vector<2x128xf32> to vector<1x2x128xf32>
    tpu.vector_store %arg10[%c0_51, %c0_52, %c0_53], %108 {strides = array<i32>} : memref<1x2x128xf32, #tpu.memory_space<vmem>>, vector<1x2x128xf32>,
    return
  }
  func.func @transform_0(%arg0: i32) -> (i32, i32, i32) {
    %c0_i32 = arith.constant 0 : i32
    %c0_i32_0 = arith.constant 0 : i32
    %c0_i32_1 = arith.constant 0 : i32
    return %arg0, %c0_i32, %c0_i32_0 : i32, i32, i32
  }
  func.func @transform_1(%arg0: i32) -> (i32, i32, i32) {
    %c0_i32 = arith.constant 0 : i32
    %c0_i32_0 = arith.constant 0 : i32
    %c0_i32_1 = arith.constant 0 : i32
    return %arg0, %c0_i32, %c0_i32_0 : i32, i32, i32
  }
  func.func @transform_2(%arg0: i32) -> (i32, i32, i32) {
    %c0_i32 = arith.constant 0 : i32
    %c0_i32_0 = arith.constant 0 : i32
    %c0_i32_1 = arith.constant 0 : i32
    return %arg0, %c0_i32, %c0_i32_0 : i32, i32, i32
  }
  func.func @transform_3(%arg0: i32) -> (i32, i32, i32) {
    %c0_i32 = arith.constant 0 : i32
    %c0_i32_0 = arith.constant 0 : i32
    %c0_i32_1 = arith.constant 0 : i32
    return %arg0, %c0_i32, %c0_i32_0 : i32, i32, i32
  }
  func.func @transform_4(%arg0: i32) -> (i32, i32) {
    %c0_i32 = arith.constant 0 : i32
    %c0_i32_0 = arith.constant 0 : i32
    %c0_i32_1 = arith.constant 0 : i32
    return %c0_i32, %c0_i32_0 : i32, i32
  }
  func.func @transform_5(%arg0: i32) -> (i32, i32) {
    %c0_i32 = arith.constant 0 : i32
    %c0_i32_0 = arith.constant 0 : i32
    %c0_i32_1 = arith.constant 0 : i32
    return %c0_i32, %c0_i32_0 : i32, i32
  }
  func.func @transform_6(%arg0: i32) -> (i32, i32) {
    %c0_i32 = arith.constant 0 : i32
    %c0_i32_0 = arith.constant 0 : i32
    %c0_i32_1 = arith.constant 0 : i32
    return %c0_i32, %c0_i32_0 : i32, i32
  }
  func.func @transform_7(%arg0: i32) -> (i32, i32) {
    %c0_i32 = arith.constant 0 : i32
    %c0_i32_0 = arith.constant 0 : i32
    %c0_i32_1 = arith.constant 0 : i32
    return %c0_i32, %c0_i32_0 : i32, i32
  }
  func.func @transform_8(%arg0: i32) -> (i32, i32) {
    %c0_i32 = arith.constant 0 : i32
    %c0_i32_0 = arith.constant 0 : i32
    %c0_i32_1 = arith.constant 0 : i32
    return %c0_i32, %c0_i32_0 : i32, i32
  }
  func.func @transform_9(%arg0: i32) -> (i32, i32, i32) {
    %c0_i32 = arith.constant 0 : i32
    %c0_i32_0 = arith.constant 0 : i32
    %c0_i32_1 = arith.constant 0 : i32
    return %arg0, %c0_i32, %c0_i32_0 : i32, i32, i32
  }
}

</mosaic_0001>

<bundles_post_ra>
// kernel: tpu_custom_call.1
= control target key start
LH: loop header
LB: loop body
LE: loop exit
PB: predicated region body
PF: predicated region fallthrough
CT: control target
= control target key end

     0   :  { %14 = vsyncpa [#allocation3], 0  ;;  %s2389_s0 = inlined_call_operand.vmem [shape: f32[2,16,4], index: 0, kind: input, shape index: {}]   ;;  %s2390_s1 = inlined_call_operand.vmem [shape: f32[2,16,16], index: 1, kind: input, shape index: {}]   ;;  %s2391_s2 = inlined_call_operand.vmem [shape: f32[2,2,16], index: 2, kind: input, shape index: {}]   ;;  %s2392_s3 = inlined_call_operand.vmem [shape: f32[2,16,2], index: 3, kind: input, shape index: {}]   ;;  %s2393_s4 = inlined_call_operand.vmem [shape: f32[4,128], index: 4, kind: input, shape index: {}]   ;;  %s2394_s5 = inlined_call_operand.hbm [shape: f32[128,128], index: 5, kind: input, shape index: {}]   ;;  %s2395_s6 = inlined_call_operand.hbm [shape: f32[128,128], index: 6, kind: input, shape index: {}]   ;;  %s2396_s7 = inlined_call_operand.hbm [shape: f32[256,128], index: 7, kind: input, shape index: {}]   ;;  %s2397_s8 = inlined_call_operand.vmem [shape: f32[8,128], index: 8, kind: input, shape index: {}]   ;;  %s2398_s9 = inlined_call_operand.hbm [shape: f32[2,2,128], index: 9, kind: output, shape index: {}]  }
   0x1   :  { %15 = vsyncpa [#allocation6], 0 }
   0x2   :  { %16 = vsyncpa [#allocation4], 0 }
   0x3   :  { %18 = vsyncpa [#allocation4 + $0x1], 0  ;;  %s2145_s30 = smov 0   ;;  %s2147_s10 = smov 0  }
   0x4   :  { %s2149_s11 = smov 0   ;;  %s2151_s12 = smov 0  }
   0x5 LB: > { %s2166_s13 = sadd.s32 4294967295, %s2082_s12   ;;  %s1590_s14 = sadd.s32 4294967294, %s2082_s12   ;;  %s2082_s12 = sphi %s2151_s12, %s2414_s12   ;;  %s2078_s11 = sphi %s2149_s11, %s2413_s11   ;;  %s2074_s10 = sphi %s2147_s10, %s2412_s10   ;;  %s2070_s30 = sphi %s2145_s30, %s2411_s30  }
   0x6   : > { %s2170_s15 = sadd.s32 1, %s2082_s12   ;;  %s240_s16 = sadd.s32 1, %s2078_s11 }
   0x7   : > { %s237_s17 = ssub.s32 %s2082_s12, %s2170_s15  ;;  %p250_p0 = scmp.ne.s32.totalorder %s2078_s11, %s2074_s10 }
   0x8   : > { %p238_p1 = scmp.eq.s32.totalorder %s237_s17, 0  ;;  %p251_p2 = scmp.eq.s32.totalorder %s2166_s13, 1 }
   0x9   : > { %p256_p3 = scmp.ne.s32.totalorder %s2074_s10, %s2070_s30  ;;  %p257_p4 = scmp.eq.s32.totalorder %s1590_s14, 1 }
   0xa   : > { %s2181_s18 = scalar_select %p238_p1, %s2078_s11, %s240_s16  }
   0xb   : > { %p2183_p5 = por %p251_p2, %p250_p0  ;;  %p2187_p6 = por %p257_p4, %p256_p3 }
   0xc   : > { %p1591_p7 = scmp.ge.s32.totalorder %s2082_s12, 1  ;;  %p264_p8 = scmp.lt.s32.totalorder %s2082_s12, 3 }
   0xd   : > { %s2401_s19 = scalar_select %p2183_p5, 1, 0 }
   0xe   : > { %s2402_s20 = scalar_select %p2187_p6, 1, 0 }
   0xf   : > { %p2399_p9 = scmp.eq.s32.totalorder %s2166_s13, 0  ;;  %p2194_p10 = pnand %p1591_p7, %p264_p8 }
  0x10   : > { %s2084_s22 = smov [#allocation5]   ;;  %s2085_s25 = smov [#allocation2]  }
  0x11   : > { %p1863_p11 = pneg %p2194_p10  ;;  %s292_s23 = sshll.u32 %s2084_s22, 4  ;;  %s293_s23 = int_to_ptr.vmem [resolvable:$true] %s292_s23 }
  0x12   : > { %s279_s26 = sshll.u32 %s2085_s25, 4  ;;  %s2086_s27 = smov [#allocation7]   ;;  %s280_s26 = int_to_ptr.vmem [resolvable:$true] %s279_s26 }
  0x13   : > { %p2202_p12 = pnand %p2399_p9, %p1863_p11  ;;  %s305_s28 = sshll.u32 %s2086_s27, 4  ;;  %s306_s28 = int_to_ptr.vmem [resolvable:$true] %s305_s28 }
  0x14   : > { %s1947_s29 = scalar_lea.vmem %s293_s23, 2048  ;;  %p1955_p3 = scmp.lt.s32.totalorder %s293_s23, %s293_s23 }
  0x15   : > { %p1938_p13 = pneg %p2202_p12  ;;  %p1948_p0 = scmp.ne.s32.totalorder %s293_s23, %s1947_s29 }
  0x16   : > { %p1956_p4 = scmp.lt.s32.totalorder %s1947_s29, %s1947_s29 }
  0x17   : > { %p1950_p1 = pnand %p1948_p0, %p1938_p13 }
  0x18   : > { %p1957_p7 = por %p1956_p4, %p1955_p3 }
  0x19   : > { %p1951_p2 = pneg %p1950_p1 }
  0x1b   : > { %p1958_p8 = pnand %p1957_p7, %p1951_p2 }
  0x1d   : > { %1961 = shalt.err (!%p1958_p8)
}
  0x1e   : > { %s2087_s14 = smov 128   ;;  %s2088_s16 = smov 8  }
  0x1f   : > { %1869 = dma.hbm_to_vmem [thread:$0]  (!%p2202_p12), %s2395_s6, 2048, %s293_s23, [#allocation6], %s2087_s14, %s2087_s14, %s2088_s16  }
  0x20   : > { %s1973_s25 = scalar_lea.vmem %s280_s26, 2048  ;;  %p1981_p9 = scmp.lt.s32.totalorder %s280_s26, %s280_s26 }
  0x21   : > { %p1974_p11 = scmp.ne.s32.totalorder %s280_s26, %s1973_s25  ;;  %p1982_p6 = scmp.lt.s32.totalorder %s1973_s25, %s1973_s25 }
  0x23   : > { %p1976_p0 = pnand %p1974_p11, %p1938_p13  ;;  %p1983_p3 = por %p1982_p6, %p1981_p9 }
  0x25   : > { %p1977_p1 = pneg %p1976_p0 }
  0x27   : > { %p1984_p2 = pnand %p1983_p3, %p1977_p1 }
  0x29   : > { %1987 = shalt.err (!%p1984_p2)
}
  0x2a   : > { %1866 = dma.hbm_to_vmem [thread:$0]  (!%p2202_p12), %s2394_s5, 2048, %s280_s26, [#allocation3], %s2087_s14, %s2087_s14, %s2088_s16  }
  0x2b   : > { %s1999_s23 = scalar_lea.vmem %s306_s28, 4096  ;;  %p2007_p11 = scmp.lt.s32.totalorder %s306_s28, %s306_s28 }
  0x2c   : > { %p2000_p4 = scmp.ne.s32.totalorder %s306_s28, %s1999_s23  ;;  %p2008_p0 = scmp.lt.s32.totalorder %s1999_s23, %s1999_s23 }
  0x2e   : > { %p2002_p7 = pnand %p2000_p4, %p1938_p13  ;;  %p2009_p5 = por %p2008_p0, %p2007_p11 }
  0x30   : > { %p2003_p8 = pneg %p2002_p7 }
  0x32   : > { %p2010_p6 = pnand %p2009_p5, %p2003_p8 }
  0x34   : > { %2013 = shalt.err (!%p2010_p6)
}
  0x35   : > { %1872 = dma.hbm_to_vmem [thread:$0]  (!%p2202_p12), %s2396_s7, 4096, %s306_s28, [#allocation6], %s2087_s14, %s2087_s14, %s2088_s16  }
  0x36   : > { %355 = sbr.rel (%p2194_p10) target bundleno = 2319 (0x90f), region = 56  ;;  %p2405_p9 = scmp.eq.s32.totalorder (!%p2194_p10), %s2166_s13, 0 }
  0x3b   : > { %2057 = dma.done.wait (%p2405_p9), [#allocation3], 2048   ;;  %p2406_p13 = pmov %p2405_p9 }
  0x3c   : > { %p2407_p1 = pmov %p2405_p9 }
  0x3d   : > { %2059 = vsyncadd (%p2406_p13), [#allocation3], 4294965248 }
  0x3e   : > { %2061 = dma.done.wait (%p2407_p1), [#allocation6], 6144   ;;  %p2408_p5 = pmov %p2407_p1 }
  0x3f   : > { %p413_p3 = scmp.lt.s32.totalorder %s2166_s13, 1  ;;  %vm452_vm0 = vcmask 1043456   ;;  %vm445_vm1 = vcmask 31744   ;;  %v440_v0 = vld [vmem:[%s2393_s4] sm:$0xf]  ;;  %v548_v3 = vld [vmem:[#allocation2 + $0x78] sm:$0xff]  ;;  %v441_v19 = vlaneseq }
  0x40   : > { %2063 = vsyncadd (%p2408_p5), [#allocation6], 4294961152  ;;  %1725 = vmatprep.subr.msk.mxu1 %vm452_vm0, %v440_v0  ;;  %v547_v4 = vld [vmem:[#allocation2 + $0x70] sm:$0xff]  ;;  %v546_v5 = vld [vmem:[#allocation2 + $0x68] sm:$0xff]  ;;  %vm624_vm2 = vcmask 130048   ;;  %v2089_v34 = vmov 0.0  }
  0x41   : > { %s2244_s24 = scalar_select %p413_p3, %s2166_s13, 1  ;;  %1726 = vmatpush3.msk.msra.mxu1 %vm452_vm0, %v440_v0  ;;  %v545_v6 = vld [vmem:[#allocation2 + $0x60] sm:$0xff]  ;;  %v544_v7 = vld [vmem:[#allocation2 + $0x58] sm:$0xff]  ;;  %v543_v8 = vld [vmem:[#allocation2 + $0x50] sm:$0xff]  ;;  %v2256_v20 = vshrl.u32 %v441_v19, 7  ;;  %vm2090_vm3 = vmmov 0  }
  0x42   : > { %1730 = vmatprep.subr.mxu1 %v548_v3  ;;  %v542_v9 = vld [vmem:[#allocation2 + $0x48] sm:$0xff]  ;;  %v541_v10 = vld [vmem:[#allocation2 + $0x40] sm:$0xff]  ;;  %v540_v11 = vld [vmem:[#allocation2 + $0x38] sm:$0xff]  ;;  %v2091_v37 = vmov 1.0   ;;  %vm1219_vm4 = vcmask 123904   ;;  %vm1337_vm11 = vcmask 1040384  }
  0x43   : > { %s2247_s21 = sshll.u32 %s2244_s24, 4  ;;  %v539_v12 = vld [vmem:[#allocation2 + $0x30] sm:$0xff]  ;;  %v538_v13 = vld [vmem:[#allocation2 + $0x28] sm:$0xff]  ;;  %v537_v14 = vld [vmem:[#allocation2 + $0x20] sm:$0xff]  ;;  %v2259_v21 = vsub.s32 0, %v2256_v20  ;;  %s1605_s26 = sshll.u32 %s2244_s24, 1 }
  0x44   : > { %s417_s14 = scalar_lea.vmem %s2389_s0, %s2247_s21  ;;  %v536_v15 = vld [vmem:[#allocation2 + $0x18] sm:$0xff]  ;;  %v535_v16 = vld [vmem:[#allocation2 + $0x10] sm:$0xff]  ;;  %v534_v17 = vld [vmem:[#allocation2 + $0x8] sm:$0xff]  ;;  %s422_s22 = scalar_lea.vmem %s2390_s1, %s2247_s21 }
  0x45   : > { %v432_v1 = vld [vmem:[%s417_s14] sm:$0xff]  ;;  %v433_v2 = vld [vmem:[%s417_s14 + $0x8] sm:$0xff]  ;;  %v896_v38 = vld [vmem:[#allocation5 + $0x78] sm:$0xff]  ;;  %s431_s16 = scalar_lea.vmem %s2392_s3, %s2247_s21  ;;  %s426_s29 = scalar_lea.vmem %s2391_s2, %s1605_s26 }
  0x46   : > { %1727 = vmatprep.mubr.msk.f32.mxu1 %vm445_vm1, %v432_v1  ;;  %v533_v18 = vld [vmem:[#allocation2] sm:$0xff]  ;;  %v2273_v33 = vld [vmem:[%s422_s22 + $0x8] sm:$0xff]  ;;  %1786 = vmatprep.subr.mxu0 %v896_v38  ;;  %v895_v47 = vld [vmem:[#allocation5 + $0x70] sm:$0xff]  ;;  %s410_s24 = sand.u32 1, %s2074_s10   ;;  %s1622_s23 = sshll.u32 %s2166_s13, 5 }
  0x47   : > { %1728 = vmatmul.mubr.msk.f32.vlgmr.msra.gmra.mxu1 %vm445_vm1, %v433_v2  ;;  %v2264_v22 = vld [vmem:[%s2397_s8] sm:$0xff]  ;;  %1787 = vmatpush3.msra.mxu0 %v896_v38  ;;  %v894_v48 = vld [vmem:[#allocation5 + $0x68] sm:$0xff]  ;;  %v892_v50 = vld [vmem:[#allocation5 + $0x58] sm:$0xff]  ;;  %v869_v2 = vsub.s32 1, %v2256_v20  ;;  %s1600_s21 = sshll.u32 %s410_s24, 1  ;;  %s1462_s14 = scalar_lea.hbm %s2398_s9, %s1622_s23 }
  0x48   : > { %1731 = vmatpush3.msra.mxu1 %v548_v3  ;;  %v444_v23 = vrot.slane %v2264_v22, %v2259_v21  ;;  %v434_v30 = vld [vmem:[%s422_s22] sm:$0xff]  ;;  %1788 = vmatprep.subr.mxu0 %v895_v47  ;;  %v891_v51 = vld [vmem:[#allocation5 + $0x50] sm:$0xff]  ;;  %v890_v52 = vld [vmem:[#allocation5 + $0x48] sm:$0xff]  ;;  %v875_v3 = vsub.s32 2, %v2256_v20  ;;  %s412_s17 = scalar_lea.vmem [#allocation8], %s1600_s21  ;;  %p2409_p12 = scmp.ne.s32.totalorder %s2401_s19, 0 }
  0x49   : > { %1732 = vmatprep.subr.mxu1 %v547_v4  ;;  %1789 = vmatpush3.msra.mxu0 %v895_v47  ;;  %v893_v49 = vld [vmem:[#allocation5 + $0x60] sm:$0xff]  ;;  %v888_v54 = vld [vmem:[#allocation5 + $0x38] sm:$0xff]  ;;  %v887_v55 = vld [vmem:[#allocation5 + $0x30] sm:$0xff]  ;;  %s1464_s22 = sshll.u32 %s412_s17, 4  ;;  %s2094_s27 = smov [#allocation8]   ;;  %s1465_s22 = int_to_ptr.vmem [resolvable:$true] %s1464_s22 }
  0x4a   : > { %1733 = vmatpush3.msra.mxu1 %v547_v4  ;;  %1790 = vmatprep.subr.mxu0 %v894_v48  ;;  %v889_v53 = vld [vmem:[#allocation5 + $0x40] sm:$0xff]  ;;  %v886_v56 = vld [vmem:[#allocation5 + $0x28] sm:$0xff]  ;;  %v884_v58 = vld [vmem:[#allocation5 + $0x18] sm:$0xff]  ;;  %s2014_s25 = scalar_lea.vmem %s1465_s22, 32 }
  0x4b   : > { %1734 = vmatprep.subr.mxu1 %v546_v5  ;;  %1791 = vmatpush3.msra.mxu0 %v894_v48  ;;  %v885_v57 = vld [vmem:[#allocation5 + $0x20] sm:$0xff]  ;;  %v883_v59 = vld [vmem:[#allocation5 + $0x10] sm:$0xff]  ;;  %v882_v60 = vld [vmem:[#allocation5 + $0x8] sm:$0xff]  ;;  %p2015_p10 = scmp.ne.s32.totalorder %s1465_s22, %s2014_s25 }
  0x4c   : > { %1735 = vmatpush3.msra.mxu1 %v546_v5  ;;  %1792 = vmatprep.subr.mxu0 %v893_v49  ;;  %v881_v61 = vld [vmem:[#allocation5] sm:$0xff] }
  0x4d   : > { %1736 = vmatprep.subr.mxu1 %v545_v6  ;;  %1793 = vmatpush3.msra.mxu0 %v893_v49  ;;  %v1371_v47 = vld [vmem:[#allocation7 + $0xe0] sm:$0xff]  ;;  %v1354_v49 = vld [vmem:[#allocation7 + $0x58] sm:$0xff]  ;;  %p2016_p2 = pnand %p2015_p10, %p2409_p12 }
  0x4e   : > { %1737 = vmatpush3.msra.mxu1 %v545_v6  ;;  %1794 = vmatprep.subr.mxu0 %v892_v50  ;;  %v870_v6 = vrot.slane %v2264_v22, %v869_v2  ;;  %v1355_v48 = vld [vmem:[#allocation7 + $0x60] sm:$0xff]  ;;  %v1361_v2 = vld [vmem:[#allocation7 + $0x90] sm:$0xff] }
  0x4f   : > { %1738 = vmatprep.subr.mxu1 %v544_v7  ;;  %1795 = vmatpush3.msra.mxu0 %v892_v50  ;;  %v1369_v50 = vld [vmem:[#allocation7 + $0xd0] sm:$0xff]  ;;  %p2017_p4 = pneg %p2016_p2 }
  0x50   : > { %1739 = vmatpush3.msra.mxu1 %v544_v7  ;;  %1796 = vmatprep.subr.mxu0 %v891_v51 }
  0x51   : > { %1740 = vmatprep.subr.mxu1 %v543_v8  ;;  %1797 = vmatpush3.msra.mxu0 %v891_v51  ;;  %v1353_v51 = vld [vmem:[#allocation7 + $0x50] sm:$0xff] }
  0x52   : > { %1741 = vmatpush3.msra.mxu1 %v543_v8  ;;  %1798 = vmatprep.subr.mxu0 %v890_v52  ;;  %v876_v8 = vrot.slane %v2264_v22, %v875_v3  ;;  %v1345_v3 = vld [vmem:[#allocation7 + $0x10] sm:$0xff] }
  0x53   : > { %1742 = vmatprep.subr.mxu1 %v542_v9  ;;  %1799 = vmatpush3.msra.mxu0 %v890_v52  ;;  %v1368_v52 = vld [vmem:[#allocation7 + $0xc8] sm:$0xff] }
  0x54   : > { %1743 = vmatpush3.msra.mxu1 %v542_v9  ;;  %1800 = vmatprep.subr.mxu0 %v889_v53 }
  0x55   : > { %1744 = vmatprep.subr.mxu1 %v541_v10  ;;  %1801 = vmatpush3.msra.mxu0 %v889_v53  ;;  %v1352_v53 = vld [vmem:[#allocation7 + $0x48] sm:$0xff] }
  0x56   : > { %1745 = vmatpush3.msra.mxu1 %v541_v10  ;;  %1802 = vmatprep.subr.mxu0 %v888_v54 }
  0x57   : > { %1746 = vmatprep.subr.mxu1 %v540_v11  ;;  %1803 = vmatpush3.msra.mxu0 %v888_v54  ;;  %v1367_v54 = vld [vmem:[#allocation7 + $0xc0] sm:$0xff] }
  0x58   : > { %1747 = vmatpush3.msra.mxu1 %v540_v11  ;;  %1804 = vmatprep.subr.mxu0 %v887_v55 }
  0x59   : > { %1748 = vmatprep.subr.mxu1 %v539_v12  ;;  %1805 = vmatpush3.msra.mxu0 %v887_v55  ;;  %v1351_v55 = vld [vmem:[#allocation7 + $0x40] sm:$0xff] }
  0x5a   : > { %1749 = vmatpush3.msra.mxu1 %v539_v12  ;;  %1806 = vmatprep.subr.mxu0 %v886_v56 }
  0x5b   : > { %1750 = vmatprep.subr.mxu1 %v538_v13  ;;  %1807 = vmatpush3.msra.mxu0 %v886_v56  ;;  %v1366_v56 = vld [vmem:[#allocation7 + $0xb8] sm:$0xff] }
  0x5c   : > { %1751 = vmatpush3.msra.mxu1 %v538_v13  ;;  %1808 = vmatprep.subr.mxu0 %v885_v57 }
  0x5d   : > { %1752 = vmatprep.subr.mxu1 %v537_v14  ;;  %1809 = vmatpush3.msra.mxu0 %v885_v57  ;;  %v1350_v57 = vld [vmem:[#allocation7 + $0x38] sm:$0xff] }
  0x5e   : > { %1753 = vmatpush3.msra.mxu1 %v537_v14  ;;  %1810 = vmatprep.subr.mxu0 %v884_v58 }
  0x5f   : > { %1754 = vmatprep.subr.mxu1 %v536_v15  ;;  %1811 = vmatpush3.msra.mxu0 %v884_v58  ;;  %v1365_v58 = vld [vmem:[#allocation7 + $0xb0] sm:$0xff] }
  0x60   : > { %1755 = vmatpush3.msra.mxu1 %v536_v15  ;;  %1812 = vmatprep.subr.mxu0 %v883_v59 }
  0x61   : > { %1756 = vmatprep.subr.mxu1 %v535_v16  ;;  %1813 = vmatpush3.msra.mxu0 %v883_v59  ;;  %v1349_v59 = vld [vmem:[#allocation7 + $0x30] sm:$0xff] }
  0x62   : > { %1757 = vmatpush3.msra.mxu1 %v535_v16  ;;  %1814 = vmatprep.subr.mxu0 %v882_v60 }
  0x63   : > { %1758 = vmatprep.subr.mxu1 %v534_v17  ;;  %1815 = vmatpush3.msra.mxu0 %v882_v60  ;;  %v1364_v60 = vld [vmem:[#allocation7 + $0xa8] sm:$0xff] }
  0x64   : > { %1759 = vmatpush3.msra.mxu1 %v534_v17  ;;  %1816 = vmatprep.subr.mxu0 %v881_v61 }
  0x65   : > { %1760 = vmatprep.subr.mxu1 %v533_v18  ;;  %1817 = vmatpush3.msra.mxu0 %v881_v61  ;;  %v1348_v61 = vld [vmem:[#allocation7 + $0x28] sm:$0xff] }
  0x66   : > { %1761 = vmatpush3.msra.mxu1 %v533_v18 }
 0x107   : > { %v1729_v24 = vpop.f32.mrf.mxu1 }
 0x108   : > { %v528_v25 = vadd.f32 %v1729_v24, %v444_v23  ;;  %v438_v24 = vld [vmem:[%s431_s16 + $0x8] sm:$0xff] }
 0x109   : > { %v522_v26 = vpop.f32.mrf.mxu1  ;;  %vm1300_vm5 = vcmp.gt.f32.partialorder %v438_v24, 0.5 }
 0x10a   : > { %v523_v27 = vadd.f32 %v522_v26, %v444_v23  ;;  %v532_v29 = vmax.f32 %v528_v25, 0.0  ;;  %v2092_v23 = vmov 0   ;;  %v437_v25 = vld [vmem:[%s431_s16] sm:$0xff]  ;;  %s1451_s16 = scalar_lea.sflag [#allocation4], %s410_s24 }
 0x10b   : > { %1927 = vset.pattern.permute.xlu1 %v2092_v23  ;;  %1926 = vset.pattern.permute.xlu0 %v2092_v23  ;;  %v2325_v26 = vld [vmem:[%s426_s29] sm:$0x3]  ;;  %vm1299_vm6 = vcmp.gt.f32.partialorder %v437_v25, 0.5  ;;  %s2018_s29 = sshll.u32 %s2094_s27, 4  ;;  %s2019_s29 = int_to_ptr.vmem [resolvable:$false] %s2018_s29 }
 0x10c   : > { %v531_v28 = vmax.f32 %v523_v27, 0.0  ;;  %v1220_v27 = vsel %vm1219_vm4, %v2325_v26, 0.0  ;;  %s2020_s13 = scalar_lea.vmem %s2019_s29, 64  ;;  %p2021_p7 = scmp.lt.s32.totalorder %s1465_s22, %s2019_s29 }
 0x10d   : > { %1221 = vadd.xlane.f32.xlu0 %v1220_v27  ;;  %p2022_p8 = scmp.lt.s32.totalorder %s2020_s13, %s2014_s25 }
 0x10e   : > { %1762 = vmatprep.mubr.f32.mxu1 %v531_v28  ;;  %v1302_v28 = vsel %vm1300_vm5, 1, %v2092_v23 }
 0x10f   : > { %1763 = vmatmul.mubr.f32.vlgmr.msra.gmra.mxu1 %v532_v29  ;;  %1307 = vperm.xlu1 %1927, %v1302_v28   ;;  %v1301_v29 = vsel %vm1299_vm6, 1, %v2092_v23  ;;  %p2023_p11 = por %p2022_p8, %p2021_p7 }
 0x110   : > { %1769 = vmatprep.mubr.msk.f32.mxu1 %vm624_vm2, %v434_v30 }
 0x111   : > { %p2024_p0 = pnand %p2023_p11, %p2017_p4 }
 0x123   : > { %1304 = vperm.xlu0 %1926, %v1301_v29  }
 0x1cf   : > { %v1764_v31 = vpop.f32.mrf.mxu1 }
 0x1d0   : > { %1765 = vmatprep.subr.mxu1 %v1764_v31 }
 0x1d1   : > { %v615_v32 = vpop.f32.mrf.mxu1  ;;  %1766 = vmatpush3.msra.mxu1 %v1764_v31 }
 0x1d2   : > { %1767 = vmatprep.subr.mxu1 %v615_v32 }
 0x1d3   : > { %1768 = vmatpush3.msra.mxu1 %v615_v32 }
 0x1d4   : > { %1770 = vmatmul.mubr.msk.f32.vlgmr.msra.gmra.mxu1 %vm624_vm2, %v2273_v33  ;;  %1772 = vmatprep.subr.mxu1 %v2089_v34 }
 0x1d5   : > { %1776 = vmatprep.mubr.msk.f32.mxu1 %vm2090_vm3, %v2089_v34 }
 0x294   : > { %v1771_v35 = vpop.f32.mrf.mxu1 }
 0x295   : > { %1773 = vmatpush3.msra.mxu1 %v1771_v35 }
 0x296   : > { %v697_v36 = vpop.f32.mrf.mxu1  ;;  %1774 = vmatprep.subr.mxu1 %v2089_v34 }
 0x297   : > { %1775 = vmatpush3.msra.mxu1 %v697_v36 }
 0x298   : > { %1777 = vmatmul.mubr.msk.f32.vlgmr.msra.gmra.mxu1 %vm624_vm2, %v2091_v37  ;;  %1779 = vmatprep.subr.mxu1 %v2089_v34 }
 0x299   : > { %1783 = vmatprep.mubr.msk.f32.mxu1 %vm2090_vm3, %v2089_v34 }
 0x358   : > { %v775_v39 = vpop.f32.mrf.mxu1 }
 0x359   : > { %v779_v40 = vmul.f32 0.0625, %v775_v39 }
 0x35a   : > { %v1778_v41 = vpop.f32.mrf.mxu1 }
 0x35b   : > { %v783_v42 = vrot.slane %v779_v40, %v2259_v21  ;;  %v1374_v41 = vld [vmem:[#allocation7 + $0xf8] sm:$0xff] }
 0x35c   : > { %1690 = vmatprep.subr.mxu0 %v1374_v41 }
 0x35d   : > { %v2287_v43 = vsub.f32 %v697_v36, %v783_v42  ;;  %v2289_v44 = vsub.f32 %v1771_v35, %v783_v42  ;;  %v1358_v42 = vld [vmem:[#allocation7 + $0x78] sm:$0xff] }
 0x35f   : > { %v787_v45 = vmul.f32 %v2289_v44, %v2289_v44  ;;  %v786_v46 = vmul.f32 %v2287_v43, %v2287_v43 }
 0x361   : > { %1780 = vmatpush3.msra.mxu1 %v787_v45  ;;  %v1372_v45 = vld [vmem:[#allocation7 + $0xe8] sm:$0xff] }
 0x362   : > { %1781 = vmatprep.subr.mxu1 %v2089_v34 }
 0x363   : > { %1782 = vmatpush3.msra.mxu1 %v786_v46  ;;  %v1356_v46 = vld [vmem:[#allocation7 + $0x68] sm:$0xff] }
 0x364   : > { %1784 = vmatmul.mubr.msk.f32.vlgmr.msra.gmra.mxu1 %vm624_vm2, %v2091_v37 }
 0x365   : > { %1825 = vmatprep.mubr.msk.f32.mxu1 %vm624_vm2, %v434_v30  ;;  %v2093_v30 = vmov 1  }
 0x366   : > { %1928 = vset.pattern.permute.xlu1 %v2093_v30  ;;  %1929 = vset.pattern.permute.xlu0 %v2093_v30 }
 0x367   : > { %1321 = vperm.xlu1 %1928, %v1301_v29  }
 0x36b   : > { %1324 = vperm.xlu1 %1928, %v1302_v28  }
 0x424   : > { %v854_v62 = vpop.f32.mrf.mxu1 }
 0x425   : > { %v858_v63 = vmul.f32 0.0625, %v854_v62  ;;  %v1363_v62 = vld [vmem:[#allocation7 + $0xa0] sm:$0xff] }
 0x426   : > { %v1785_v0 = vpop.f32.mrf.mxu1 }
 0x427   : > { %v859_v1 = vadd.f32 1e-05, %v858_v63  ;;  %v1347_v63 = vld [vmem:[#allocation7 + $0x20] sm:$0xff]  ;;  %v1362_v0 = vld [vmem:[#allocation7 + $0x98] sm:$0xff] }
 0x429   : > { %1930 = vrsqrt.f32 %v859_v1  ;;  %v1346_v1 = vld [vmem:[#allocation7 + $0x18] sm:$0xff] }
 0x436   : > { %v1931_v4 = vpop.eup %1930 }
 0x437   : > { %v864_v5 = vrot.slane %v1931_v4, %v2259_v21 }
 0x439   : > { %v865_v7 = vmul.f32 %v864_v5, %v2287_v43  ;;  %v866_v9 = vmul.f32 %v864_v5, %v2289_v44  ;;  %v1373_v43 = vld [vmem:[#allocation7 + $0xf0] sm:$0xff] }
 0x43a   : > { %v1357_v44 = vld [vmem:[#allocation7 + $0x70] sm:$0xff] }
 0x43b   : > { %v871_v10 = vmul.f32 %v870_v6, %v865_v7  ;;  %v872_v11 = vmul.f32 %v870_v6, %v866_v9  ;;  %v1207_v9 = vsub.s32 3, %v2256_v20 }
 0x43d   : > { %v877_v12 = vadd.f32 %v876_v8, %v871_v10  ;;  %v878_v13 = vadd.f32 %v876_v8, %v872_v11  ;;  %v1308_v8 = vpop.permute.xlu1 %1307  ;;  %v1213_v10 = vsub.s32 4, %v2256_v20 }
 0x43e   : > { %vm1310_vm7 = vcmp.eq.s32.totalorder %v1308_v8, 1 }
 0x43f   : > { %v879_v14 = vmax.f32 %v877_v12, 0.0  ;;  %v880_v15 = vmax.f32 %v878_v13, 0.0  ;;  %v1222_v13 = vpop.xlane.xlu0 %1221 }
 0x440   : > { %vm1339_vm12 = vcmp.gt.f32.partialorder %v1222_v13, 0.0 }
 0x441   : > { %1818 = vmatprep.mubr.f32.mxu0 %v879_v14  ;;  %v1322_v11 = vpop.permute.xlu1 %1321  ;;  %v1208_v14 = vrot.slane %v2264_v22, %v1207_v9 }
 0x442   : > { %1819 = vmatmul.mubr.f32.vlgmr.msra.gmra.mxu0 %v880_v15  ;;  %vm1326_vm8 = vcmp.eq.s32.totalorder %v1322_v11, 1 }
 0x443   : > { %1691 = vmatpush3.msra.mxu0 %v1358_v42  ;;  %v1305_v25 = vpop.permute.xlu0 %1304 }
 0x444   : > { %1692 = vmatprep.subr.mxu0 %v1373_v43  ;;  %vm1309_vm10 = vcmp.eq.s32.totalorder %v1305_v25, 1 }
 0x445   : > { %1693 = vmatpush3.msra.mxu0 %v1357_v44  ;;  %v1325_v24 = vpop.permute.xlu1 %1324 }
 0x446   : > { %1694 = vmatprep.subr.mxu0 %v1372_v45  ;;  %vm1327_vm9 = vcmp.eq.s32.totalorder %v1325_v24, 1 }
 0x447   : > { %1695 = vmatpush3.msra.mxu0 %v1356_v46 }
 0x448   : > { %1696 = vmatprep.subr.mxu0 %v1371_v47 }
 0x449   : > { %1697 = vmatpush3.msra.mxu0 %v1355_v48 }
 0x502   : > { %v1820_v16 = vpop.f32.mrf.mxu0 }
 0x503   : > { %1821 = vmatprep.subr.mxu1 %v1820_v16 }
 0x504   : > { %v963_v17 = vpop.f32.mrf.mxu0  ;;  %1822 = vmatpush3.msra.mxu1 %v1820_v16  ;;  %v1214_v16 = vrot.slane %v2264_v22, %v1213_v10 }
 0x505   : > { %1823 = vmatprep.subr.mxu1 %v963_v17 }
 0x506   : > { %1824 = vmatpush3.msra.mxu1 %v963_v17 }
 0x507   : > { %1826 = vmatmul.mubr.msk.f32.vlgmr.msra.gmra.mxu1 %vm624_vm2, %v2273_v33  ;;  %1828 = vmatprep.subr.mxu1 %v2089_v34 }
 0x508   : > { %1832 = vmatprep.mubr.msk.f32.mxu1 %vm2090_vm3, %v2089_v34 }
 0x5c7   : > { %v1827_v18 = vpop.f32.mrf.mxu1 }
 0x5c8   : > { %1829 = vmatpush3.msra.mxu1 %v1827_v18 }
 0x5c9   : > { %v1038_v19 = vpop.f32.mrf.mxu1  ;;  %1830 = vmatprep.subr.mxu1 %v2089_v34 }
 0x5ca   : > { %1831 = vmatpush3.msra.mxu1 %v1038_v19 }
 0x5cb   : > { %1833 = vmatmul.mubr.msk.f32.vlgmr.msra.gmra.mxu1 %vm624_vm2, %v2091_v37  ;;  %1835 = vmatprep.subr.mxu1 %v2089_v34 }
 0x5cc   : > { %1839 = vmatprep.mubr.msk.f32.mxu1 %vm2090_vm3, %v2089_v34 }
 0x68b   : > { %v1113_v31 = vpop.f32.mrf.mxu1 }
 0x68c   : > { %v1117_v32 = vmul.f32 0.0625, %v1113_v31 }
 0x68d   : > { %v1834_v33 = vpop.f32.mrf.mxu1 }
 0x68e   : > { %v1121_v35 = vrot.slane %v1117_v32, %v2259_v21 }
 0x690   : > { %v2329_v36 = vsub.f32 %v1038_v19, %v1121_v35  ;;  %v2331_v38 = vsub.f32 %v1827_v18, %v1121_v35 }
 0x692   : > { %v1125_v39 = vmul.f32 %v2331_v38, %v2331_v38  ;;  %v1124_v40 = vmul.f32 %v2329_v36, %v2329_v36 }
 0x694   : > { %1836 = vmatpush3.msra.mxu1 %v1125_v39 }
 0x695   : > { %1837 = vmatprep.subr.mxu1 %v2089_v34 }
 0x696   : > { %1838 = vmatpush3.msra.mxu1 %v1124_v40 }
 0x697   : > { %1840 = vmatmul.mubr.msk.f32.vlgmr.msra.gmra.mxu1 %vm624_vm2, %v2091_v37  ;;  %1842 = vmatprep.subr.mxu1 %v2089_v34  ;;  %v1370_v37 = vld [vmem:[#allocation7 + $0xd8] sm:$0xff] }
 0x698   : > { %1846 = vmatprep.mubr.msk.f32.mxu1 %vm2090_vm3, %v2089_v34  ;;  %1698 = vmatprep.subr.mxu0 %v1370_v37 }
 0x699   : > { %1699 = vmatpush3.msra.mxu0 %v1354_v49 }
 0x69a   : > { %1700 = vmatprep.subr.mxu0 %v1369_v50  ;;  %v1344_v50 = vld [vmem:[#allocation7 + $0x8] sm:$0xff] }
 0x69b   : > { %1701 = vmatpush3.msra.mxu0 %v1353_v51  ;;  %v1359_v51 = vld [vmem:[#allocation7 + $0x80] sm:$0xff] }
 0x69c   : > { %1702 = vmatprep.subr.mxu0 %v1368_v52  ;;  %v1223_v52 = vmax.f32 %v1222_v13, 1.0 }
 0x69d   : > { %1703 = vmatpush3.msra.mxu0 %v1352_v53 }
 0x69e   : > { %1704 = vmatprep.subr.mxu0 %v1367_v54 }
 0x69f   : > { %1705 = vmatpush3.msra.mxu0 %v1351_v55 }
 0x6a0   : > { %1706 = vmatprep.subr.mxu0 %v1366_v56 }
 0x6a1   : > { %1707 = vmatpush3.msra.mxu0 %v1350_v57  ;;  %v1377_v57 = vsub.s32 5, %v2256_v20 }
 0x6a2   : > { %1708 = vmatprep.subr.mxu0 %v1365_v58 }
 0x6a3   : > { %1709 = vmatpush3.msra.mxu0 %v1349_v59  ;;  %v1378_v59 = vrot.slane %v2264_v22, %v1377_v57 }
 0x6a4   : > { %1710 = vmatprep.subr.mxu0 %v1364_v60 }
 0x6a5   : > { %1711 = vmatpush3.msra.mxu0 %v1348_v61 }
 0x6a6   : > { %1712 = vmatprep.subr.mxu0 %v1363_v62 }
 0x6a7   : > { %1713 = vmatpush3.msra.mxu0 %v1347_v63 }
 0x6a8   : > { %1714 = vmatprep.subr.mxu0 %v1362_v0 }
 0x6a9   : > { %1715 = vmatpush3.msra.mxu0 %v1346_v1 }
 0x6aa   : > { %1716 = vmatprep.subr.mxu0 %v1361_v2 }
 0x6ab   : > { %1717 = vmatpush3.msra.mxu0 %v1345_v3 }
 0x757   : > { %v1192_v4 = vpop.f32.mrf.mxu1 }
 0x758   : > { %v1196_v5 = vmul.f32 0.0625, %v1192_v4 }
 0x759   : > { %v1841_v6 = vpop.f32.mrf.mxu1 }
 0x75a   : > { %v1197_v7 = vadd.f32 1e-05, %v1196_v5 }
 0x75c   : > { %1932 = vrsqrt.f32 %v1197_v7 }
 0x75d   : > { %1934 = vrcp.f32 %v1223_v52 }
 0x769   : > { %v1933_v12 = vpop.eup %1932 }
 0x76a   : > { %v1202_v15 = vrot.slane %v1933_v12, %v2259_v21  ;;  %v1935_v53 = vpop.eup %1934 }
 0x76c   : > { %v1204_v17 = vmul.f32 %v1202_v15, %v2331_v38  ;;  %v1203_v18 = vmul.f32 %v1202_v15, %v2329_v36 }
 0x76e   : > { %v1210_v19 = vmul.f32 %v1208_v14, %v1204_v17  ;;  %v1209_v23 = vmul.f32 %v1208_v14, %v1203_v18 }
 0x770   : > { %v1216_v27 = vadd.f32 %v1214_v16, %v1210_v19  ;;  %v1215_v28 = vadd.f32 %v1214_v16, %v1209_v23 }
 0x772   : > { %v1218_v29 = vmax.f32 %v1216_v27, 0.0  ;;  %v1217_v30 = vmax.f32 %v1215_v28, 0.0 }
 0x774   : > { %v1312_v31 = vsel %vm1310_vm7, %v1218_v29, -1e+30  ;;  %v1328_v21 = vsel %vm1326_vm8, %v1217_v30, -1e+30  ;;  %v1329_v32 = vsel %vm1327_vm9, %v1218_v29, -1e+30  ;;  %1843 = vmatpush3.msra.mxu1 %v1218_v29 }
 0x775   : > { %v1330_v33 = vmax.f32 %v1328_v21, %v1329_v32  ;;  %v1311_v35 = vsel %vm1309_vm10, %v1217_v30, -1e+30  ;;  %1844 = vmatprep.subr.mxu1 %v2089_v34  ;;  %v1360_v34 = vld [vmem:[#allocation7 + $0x88] sm:$0xff] }
 0x776   : > { %v1313_v36 = vmax.f32 %v1311_v35, %v1312_v31  ;;  %1845 = vmatpush3.msra.mxu1 %v1217_v30  ;;  %1718 = vmatprep.subr.mxu0 %v1360_v34 }
 0x777   : > { %v1331_v38 = vrot.slane %v1330_v33, 4  ;;  %1847 = vmatmul.mubr.msk.f32.vlgmr.msra.gmra.mxu1 %vm624_vm2, %v2325_v26  ;;  %1719 = vmatpush3.msra.mxu0 %v1344_v50  ;;  %v1343_v26 = vld [vmem:[#allocation7] sm:$0xff] }
 0x778   : > { %v1314_v39 = vrot.slane %v1313_v36, 4  ;;  %1720 = vmatprep.subr.mxu0 %v1359_v51 }
 0x779   : > { %v1332_v40 = vmax.f32 %v1330_v33, %v1331_v38  ;;  %1721 = vmatpush3.msra.mxu0 %v1343_v26 }
 0x77a   : > { %v1315_v41 = vmax.f32 %v1313_v36, %v1314_v39 }
 0x77b   : > { %v1333_v42 = vrot.slane %v1332_v40, 2 }
 0x77c   : > { %v1316_v43 = vrot.slane %v1315_v41, 2 }
 0x77d   : > { %v1334_v44 = vmax.f32 %v1332_v40, %v1333_v42 }
 0x77e   : > { %v1317_v45 = vmax.f32 %v1315_v41, %v1316_v43 }
 0x77f   : > { %v1335_v46 = vrot.slane %v1334_v44, 1 }
 0x780   : > { %v1318_v47 = vrot.slane %v1317_v45, 1 }
 0x781   : > { %v1336_v48 = vmax.f32 %v1334_v44, %v1335_v46 }
 0x782   : > { %v1319_v37 = vmax.f32 %v1317_v45, %v1318_v47 }
 0x784   : > { %v1338_v49 = vsel %vm1337_vm11, %v1319_v37, %v1336_v48 }
 0x837   : > { %v1294_v54 = vpop.f32.mrf.mxu1 }
 0x838   : > { %v1298_v55 = vmul.f32 %v1935_v53, %v1294_v54 }
 0x839   : > { %v1848_v56 = vpop.f32.mrf.mxu1 }
 0x83a   : > { %1443 = vmatprep.mubr.f32.mxu0 %v1298_v55 }
 0x83b   : > { %1620 = vmatmul.mubr.msk.f32.vlgmr.msra.gmra.mxu0 %vm1339_vm12, %v1338_v49 }
 0x8fb   : > { %v1722_v58 = vpop.f32.mrf.mxu0 }
 0x8fd   : > { %v1723_v60 = vpop.f32.mrf.mxu0 }
 0x8fe   : > { %v1724_v61 = vadd.f32 %v1723_v60, %v1722_v58 }
 0x900   : > { %v1446_v62 = vadd.f32 %v1724_v61, %v1378_v59 }
 0x902   : > { %1449 = vst [vmem:[%s412_s17] sm:$0x3] %v1446_v62 }
 0x903   : > { %2027 = shalt.err (!%p2024_p0)
}
 0x904   : > { %s2028_s21 = scalar_lea.hbm %s1462_s14, 32  ;;  %s2032_s17 = scalar_lea.hbm %s2398_s9, 64 }
 0x905   : > { %p2029_p6 = scmp.ne.s32.totalorder %s1462_s14, %s2028_s21  ;;  %p2033_p1 = scmp.lt.s32.totalorder %s1462_s14, %s2398_s9 }
 0x906   : > { %p2034_p5 = scmp.lt.s32.totalorder %s2032_s17, %s2028_s21 }
 0x907   : > { %p2030_p9 = pnand %p2029_p6, %p2409_p12 }
 0x908   : > { %p2035_p3 = por %p2034_p5, %p2033_p1 }
 0x909   : > { %p2031_p13 = pneg %p2030_p9 }
 0x90b   : > { %p2036_p10 = pnand %p2035_p3, %p2031_p13 }
 0x90d   : > { %2039 = shalt.err (!%p2036_p10)
}
 0x90e   : > { %1861 = dma.vmem_to_hbm [thread:$0]  (%p2409_p12), %s1465_s22, 32, %s1462_s14, %s1451_s16  }
 0x90f PF: > { %p1883_p2 = scmp.ge.s32.totalorder %s2082_s12, 2  ;;  %s1476_s25 = sand.u32 1, %s2070_s30  }
 0x910   : > { %p2410_p4 = scmp.ne.s32.totalorder %s2402_s20, 0  ;;  %s1477_s27 = scalar_lea.sflag [#allocation4], %s1476_s25 }
 0x912   : > { %p1874_p7 = pnand %p1883_p2, %p2410_p4 }
 0x914   : > { %p1875_p8 = pneg %p1874_p7 }
 0x916   : > { %2065 = dma.done.wait (%p1875_p8), %s1477_s27, 32  }
 0x917   : > { %2067 = vsyncadd (%p1875_p8), %s1477_s27, 4294967264  ;;  %p21_p11 = scmp.ge.s32.totalorder %s2170_s15, 4   ;;  %s2411_s30 = smov %s2074_s10 }
 0x918   : > { %s2412_s10 = smov %s2078_s11  ;;  %s2413_s11 = smov %s2181_s18 }
 0x919   : > { %s2414_s12 = smov %s2170_s15  ;;  %23 = sbr.rel (!%p21_p11) target bundleno = 5 (0x5), region = 113 }
 0x91e   :  { %1482 = vsyncpa [#allocation3], 1 }
 0x91f   :  { %1484 = vsyncpa [#allocation3 + $0x1], 1 }
 0x920   :  { %1485 = vsyncpa [#allocation6], 1 }
 0x921   :  { %1486 = vsyncpa [#allocation4], 1 }
 0x922   :  { %1488 = vsyncpa [#allocation4 + $0x1], 1 }

</bundles_post_ra>
